<compile_context>
chip_gen: v5e
topology: v5e:2x2
jax: 0.10.0
libtpu: 0.0.40
codegen_flags: <defaults>
</compile_context>

<pallas_src>
import jax
import jax.numpy as jnp
from jax.experimental import pallas as pl
from jax.experimental.pallas import tpu as pltpu

_LANE = 128


def _round_up(x, m):
    return (x + m - 1) // m * m


def _mxu_feature_multiple():
    """v6e/v7x MXU tiles are 256x256; v5e (and older) are 128x128."""
    try:
        kind = jax.devices()[0].device_kind.lower()
    except Exception:
        return _LANE
    if "v6" in kind or "v7" in kind:
        return 256
    return _LANE


def _pad_feature(d, mxu_mult):
    # Lane-dense outputs (>=128); dims beyond 128 rounded to the MXU width.
    return _round_up(d, _LANE) if d <= _LANE else _round_up(d, mxu_mult)


def _pad2d(a, rows, cols, dtype):
    out = jnp.zeros((rows, cols), dtype)
    return out.at[: a.shape[0], : a.shape[1]].set(a.astype(dtype))


def _choose_tile_b(batch):
    """Batch tile: multiple of 16, <=512 rows, and >=2 grid steps whenever the
    batch allows it (megacore / v7x dual-TC sharding of the 'parallel' axis).
    Also keeps the ragged tail small (at most ~tile_b/2 wasted rows)."""
    if batch <= 16:
        return _round_up(batch, 8)                      # single tiny tile
    b16 = _round_up(batch, 16)
    return min(512, _round_up(pl.cdiv(b16, 2), 16))


def _rib_fused_kernel(x_ref, ew1_ref, eb1_ref, ew2_ref, eb2_ref,
                      dw1_ref, db1_ref, dw2_ref, db2_ref,
                      y_ref, z_ref):
    """Fused RIB forward for one batch tile.

       z = relu(x @ Ew1 + eb1) @ Ew2 + eb2    (encoder MLP)
       y = relu(z @ Dw1 + db1) @ Dw2 + db2    (decoder MLP)

    Matmuls run on the MXU in bf16 with f32 accumulation; bias add / ReLU /
    casts on the VPU in f32.  Outputs are stored lane-dense in bf16.
    """
    x = x_ref[...].astype(jnp.bfloat16)                 # cast in-kernel (no wrapper pass)
    h = jnp.dot(x, ew1_ref[...], preferred_element_type=jnp.float32)
    h = jnp.maximum(h + eb1_ref[...], 0.0)
    z = jnp.dot(h.astype(jnp.bfloat16), ew2_ref[...],
                preferred_element_type=jnp.float32) + eb2_ref[...]
    z_ref[...] = z.astype(z_ref.dtype)                  # bf16 store (half the writeback)

    g = jnp.dot(z.astype(jnp.bfloat16), dw1_ref[...],
                preferred_element_type=jnp.float32)
    g = jnp.maximum(g + db1_ref[...], 0.0)
    y = jnp.dot(g.astype(jnp.bfloat16), dw2_ref[...],
                preferred_element_type=jnp.float32) + db2_ref[...]
    y_ref[...] = y.astype(y_ref.dtype)


def _rib_call(x_p, padded_params, tile_b, single_buffer_params):
    """One fused pallas_call over a 1-D batch grid. Returns padded (y, z)."""
    ew1, eb1, ew2, eb2, dw1, db1, dw2, db2 = padded_params
    padded_batch, in_dim = x_p.shape
    he_p, lat_p = ew1.shape[1], ew2.shape[1]
    hd_p, out_p = dw1.shape[1], dw2.shape[1]
    grid = (padded_batch // tile_b,)

    # Weights/biases: constant index_map -> VMEM-resident across all steps.
    # Buffered(1) drops their (useless) second pipeline buffer.
    pipe_kwargs = {"pipeline_mode": pl.Buffered(1)} if single_buffer_params else {}

    def resident(shape):
        return pl.BlockSpec(shape, lambda i: (0, 0), **pipe_kwargs)

    # VMEM budget: double-buffered activation tiles + f32 intermediates
    # (h, g, z, y accumulators) + resident params; capped well under the
    # 64 MiB physical VMEM of a v7x TensorCore.
    param_bytes = sum(int(p.size) * p.dtype.itemsize for p in padded_params)
    io_tile_bytes = tile_b * (in_dim * 4 + out_p * 2 + lat_p * 2)
    inter_bytes = tile_b * (he_p + lat_p + hd_p + out_p) * 4
    param_factor = 1 if single_buffer_params else 2
    vmem_limit = int(min(
        48 << 20,
        max(16 << 20,
            2 * io_tile_bytes + inter_bytes + param_factor * param_bytes
            + (2 << 20))))

    flops = 2 * padded_batch * (in_dim * he_p + he_p * lat_p
                                + lat_p * hd_p + hd_p * out_p)
    bytes_accessed = (padded_batch * (in_dim * 4 + out_p * 2 + lat_p * 2)
                      + param_bytes)

    return pl.pallas_call(
        _rib_fused_kernel,
        out_shape=(
            jax.ShapeDtypeStruct((padded_batch, out_p), jnp.bfloat16),
            jax.ShapeDtypeStruct((padded_batch, lat_p), jnp.bfloat16),
        ),
        grid=grid,
        in_specs=[
            pl.BlockSpec((tile_b, in_dim), lambda i: (i, 0)),
            resident(ew1.shape), resident(eb1.shape),
            resident(ew2.shape), resident(eb2.shape),
            resident(dw1.shape), resident(db1.shape),
            resident(dw2.shape), resident(db2.shape),
        ],
        out_specs=(
            pl.BlockSpec((tile_b, out_p), lambda i: (i, 0)),
            pl.BlockSpec((tile_b, lat_p), lambda i: (i, 0)),
        ),
        compiler_params=pltpu.CompilerParams(
            dimension_semantics=("parallel",),   # megacore / dual-TC shardable
            vmem_limit_bytes=vmem_limit,
        ),
        cost_estimate=pl.CostEstimate(
            flops=flops, transcendentals=0, bytes_accessed=bytes_accessed),
    )(x_p, ew1, eb1, ew2, eb2, dw1, db1, dw2, db2)


# Cache whether this jax build accepts pipeline_mode=Buffered(1) on in_specs.
_SINGLE_BUFFER_PARAMS_OK = [True]


def rib_forward_padded(x, padded_params):
    batch, in_dim = x.shape
    tile_b = _choose_tile_b(batch)
    padded_batch = _round_up(batch, tile_b)

    if padded_batch != batch:
        # Ragged tail only: zero rows are exact and discarded by the caller.
        x_in = jnp.zeros((padded_batch, in_dim), x.dtype).at[:batch].set(x)
    else:
        x_in = x        # fast path: no wrapper pad/cast pass at all

    if _SINGLE_BUFFER_PARAMS_OK[0]:
        try:
            return _rib_call(x_in, padded_params, tile_b, True)
        except Exception:
            # pipeline_mode not supported on this build; use default buffering.
            _SINGLE_BUFFER_PARAMS_OK[0] = False
    return _rib_call(x_in, padded_params, tile_b, False)


class RIBPallas:
    """JAX/Pallas port of the RIB wrapper with MLP encoder / decoder."""

    def __init__(self, in_dim, enc_hidden, latent_dim, dec_hidden, out_dim, key):
        k = jax.random.split(key, 8)
        scale = 0.1
        self.in_dim, self.latent_dim, self.out_dim = in_dim, latent_dim, out_dim
        # Unpadded f32 params (y = x @ W + b, i.e. nn.Linear with W = weight.T).
        self.enc_w1 = scale * jax.random.normal(k[0], (in_dim, enc_hidden), jnp.float32)
        self.enc_b1 = scale * jax.random.normal(k[1], (enc_hidden,), jnp.float32)
        self.enc_w2 = scale * jax.random.normal(k[2], (enc_hidden, latent_dim), jnp.float32)
        self.enc_b2 = scale * jax.random.normal(k[3], (latent_dim,), jnp.float32)
        self.dec_w1 = scale * jax.random.normal(k[4], (latent_dim, dec_hidden), jnp.float32)
        self.dec_b1 = scale * jax.random.normal(k[5], (dec_hidden,), jnp.float32)
        self.dec_w2 = scale * jax.random.normal(k[6], (dec_hidden, out_dim), jnp.float32)
        self.dec_b2 = scale * jax.random.normal(k[7], (out_dim,), jnp.float32)
        self.DIB_phase = "train_both"

        # Pre-pad feature dims once at init (lane-dense; MXU-width on v6e/v7x)
        # and pre-cast weights to bf16.  Zero padding keeps the math exact.
        # ew1's contraction dim stays at in_dim so x enters the kernel unpadded.
        # TODO(synk): optional fp8 weight storage on v7x (halves resident VMEM).
        mxu = _mxu_feature_multiple()
        he_p = _pad_feature(enc_hidden, mxu)
        lat_p = _pad_feature(latent_dim, mxu)
        hd_p = _pad_feature(dec_hidden, mxu)
        out_p = _pad_feature(out_dim, mxu)
        self._padded = (
            _pad2d(self.enc_w1, in_dim, he_p, jnp.bfloat16),
            _pad2d(self.enc_b1.reshape(1, -1), 1, he_p, jnp.float32),
            _pad2d(self.enc_w2, he_p, lat_p, jnp.bfloat16),
            _pad2d(self.enc_b2.reshape(1, -1), 1, lat_p, jnp.float32),
            _pad2d(self.dec_w1, lat_p, hd_p, jnp.bfloat16),
            _pad2d(self.dec_b1.reshape(1, -1), 1, hd_p, jnp.float32),
            _pad2d(self.dec_w2, hd_p, out_p, jnp.bfloat16),
            _pad2d(self.dec_b2.reshape(1, -1), 1, out_p, jnp.float32),
        )

    def forward(self, X):
        if self.DIB_phase != "train_both":
            # TODO(synk): 'minimality_only' phase (freeze encoder / reset decoder)
            # is training-loop logic, not part of the forward compute path.
            raise NotImplementedError(f"unsupported DIB_phase: {self.DIB_phase}")
        x = X[0]                      # RIB.forward indexes X[0]
        batch = x.shape[0]
        y_pad, z_pad = rib_forward_padded(x, self._padded)
        # Slice only when the padded shape differs from the logical one.
        y_pred = y_pad if y_pad.shape == (batch, self.out_dim) \
            else y_pad[:batch, : self.out_dim]
        z_sample = z_pad if z_pad.shape == (batch, self.latent_dim) \
            else z_pad[:batch, : self.latent_dim]
        return (y_pred, z_sample)


if __name__ == "__main__":
    key = jax.random.PRNGKey(0)
    k_model, k_x = jax.random.split(key)

    batch, in_dim = 8, 32
    enc_hidden, latent_dim = 32, 16
    dec_hidden, out_dim = 32, 10

    rib = RIBPallas(in_dim, enc_hidden, latent_dim, dec_hidden, out_dim, k_model)

    x = jax.random.normal(k_x, (batch, in_dim), jnp.float32)
    X = (x,)

    y_pred, z_sample = rib.forward(X)
    jax.block_until_ready((y_pred, z_sample))

    # Reference mirroring the kernel's bf16-input / f32-accumulate math.
    def ref_mlp(xx, w1, b1, w2, b2):
        h = jnp.maximum(
            jnp.dot(xx.astype(jnp.bfloat16), w1.astype(jnp.bfloat16),
                    preferred_element_type=jnp.float32) + b1, 0.0)
        return jnp.dot(h.astype(jnp.bfloat16), w2.astype(jnp.bfloat16),
                       preferred_element_type=jnp.float32) + b2

    z_ref = ref_mlp(x, rib.enc_w1, rib.enc_b1, rib.enc_w2, rib.enc_b2)
    y_ref = ref_mlp(z_ref, rib.dec_w1, rib.dec_b1, rib.dec_w2, rib.dec_b2)

    assert z_sample.shape == (batch, latent_dim)
    assert y_pred.shape == (batch, out_dim)
    # Outputs are stored in bf16 (store-traffic optimization) -> bf16 tolerance.
    assert jnp.allclose(z_sample.astype(jnp.float32), z_ref, atol=2e-2, rtol=2e-2)
    assert jnp.allclose(y_pred.astype(jnp.float32), y_ref, atol=2e-2, rtol=2e-2)

    print("KERNEL_OK")
</pallas_src>

<mosaic_0001>
module attributes {stable_mosaic.version = 11 : i64} {
  func.func @_rib_fused_kernel(%arg0: i32, %arg1: memref<8x32xf32, #tpu.memory_space<vmem>>, %arg2: memref<32x128xbf16, #tpu.memory_space<vmem>>, %arg3: memref<1x128xf32, #tpu.memory_space<vmem>>, %arg4: memref<128x128xbf16, #tpu.memory_space<vmem>>, %arg5: memref<1x128xf32, #tpu.memory_space<vmem>>, %arg6: memref<128x128xbf16, #tpu.memory_space<vmem>>, %arg7: memref<1x128xf32, #tpu.memory_space<vmem>>, %arg8: memref<128x128xbf16, #tpu.memory_space<vmem>>, %arg9: memref<1x128xf32, #tpu.memory_space<vmem>>, %arg10: memref<8x128xbf16, #tpu.memory_space<vmem>>, %arg11: memref<8x128xbf16, #tpu.memory_space<vmem>>) attributes {dimension_semantics = [#tpu.dimension_semantics<parallel>], iteration_bounds = array<i64: 1>, scalar_prefetch = 0 : i64, scratch_operands = 0 : i64, tpu.core_type = #tpu.core_type<tc>, window_params = [{transform_indices = @transform_0, window_bounds = array<i64: 8, 32>}, {pipeline_mode = #tpu.pipeline_mode<synchronous>, transform_indices = @transform_1, window_bounds = array<i64: 32, 128>}, {pipeline_mode = #tpu.pipeline_mode<synchronous>, transform_indices = @transform_2, window_bounds = array<i64: 1, 128>}, {pipeline_mode = #tpu.pipeline_mode<synchronous>, transform_indices = @transform_3, window_bounds = array<i64: 128, 128>}, {pipeline_mode = #tpu.pipeline_mode<synchronous>, transform_indices = @transform_4, window_bounds = array<i64: 1, 128>}, {pipeline_mode = #tpu.pipeline_mode<synchronous>, transform_indices = @transform_5, window_bounds = array<i64: 128, 128>}, {pipeline_mode = #tpu.pipeline_mode<synchronous>, transform_indices = @transform_6, window_bounds = array<i64: 1, 128>}, {pipeline_mode = #tpu.pipeline_mode<synchronous>, transform_indices = @transform_7, window_bounds = array<i64: 128, 128>}, {pipeline_mode = #tpu.pipeline_mode<synchronous>, transform_indices = @transform_8, window_bounds = array<i64: 1, 128>}, {transform_indices = @transform_9, window_bounds = array<i64: 8, 128>}, {transform_indices = @transform_10, window_bounds = array<i64: 8, 128>}]} {
    %c0 = arith.constant 0 : index
    %c0_0 = arith.constant 0 : index
    %0 = vector.load %arg1[%c0, %c0_0] : memref<8x32xf32, #tpu.memory_space<vmem>>, vector<8x32xf32>
    %1 = arith.truncf %0 : vector<8x32xf32> to vector<8x32xbf16>
    %c0_1 = arith.constant 0 : index
    %c0_2 = arith.constant 0 : index
    %2 = vector.load %arg2[%c0_1, %c0_2] : memref<32x128xbf16, #tpu.memory_space<vmem>>, vector<32x128xbf16>
    %cst = arith.constant dense<0.000000e+00> : vector<8x128xf32>
    %3 = tpu.matmul %1, %2, %cst {dimension_numbers = #tpu.dot_dimension_numbers<[1], [0], [0], [1], [0, 0, 1, 1], [], []>} : vector<8x32xbf16>, vector<32x128xbf16>, vector<8x128xf32> -> vector<8x128xf32>
    %c0_3 = arith.constant 0 : index
    %c0_4 = arith.constant 0 : index
    %4 = vector.load %arg3[%c0_3, %c0_4] : memref<1x128xf32, #tpu.memory_space<vmem>>, vector<1x128xf32>
    %5 = vector.broadcast %4 : vector<1x128xf32> to vector<8x128xf32>
    %6 = arith.addf %3, %5 : vector<8x128xf32>
    %cst_5 = arith.constant 0.000000e+00 : f32
    %7 = vector.broadcast %cst_5 : f32 to vector<8x128xf32>
    %8 = arith.maximumf %6, %7 : vector<8x128xf32>
    %9 = arith.truncf %8 : vector<8x128xf32> to vector<8x128xbf16>
    %c0_6 = arith.constant 0 : index
    %c0_7 = arith.constant 0 : index
    %10 = vector.load %arg4[%c0_6, %c0_7] : memref<128x128xbf16, #tpu.memory_space<vmem>>, vector<128x128xbf16>
    %cst_8 = arith.constant dense<0.000000e+00> : vector<8x128xf32>
    %11 = tpu.matmul %9, %10, %cst_8 {dimension_numbers = #tpu.dot_dimension_numbers<[1], [0], [0], [1], [0, 0, 1, 1], [], []>} : vector<8x128xbf16>, vector<128x128xbf16>, vector<8x128xf32> -> vector<8x128xf32>
    %c0_9 = arith.constant 0 : index
    %c0_10 = arith.constant 0 : index
    %12 = vector.load %arg5[%c0_9, %c0_10] : memref<1x128xf32, #tpu.memory_space<vmem>>, vector<1x128xf32>
    %13 = vector.broadcast %12 : vector<1x128xf32> to vector<8x128xf32>
    %14 = arith.addf %11, %13 : vector<8x128xf32>
    %15 = arith.truncf %14 : vector<8x128xf32> to vector<8x128xbf16>
    %c0_11 = arith.constant 0 : index
    %c0_12 = arith.constant 0 : index
    %16 = vector.load %arg11[%c0_11, %c0_12] : memref<8x128xbf16, #tpu.memory_space<vmem>>, vector<8x128xbf16>
    tpu.vector_store %arg11[%c0_11, %c0_12], %15 {strides = array<i32>} : memref<8x128xbf16, #tpu.memory_space<vmem>>, vector<8x128xbf16>,
    %17 = arith.truncf %14 : vector<8x128xf32> to vector<8x128xbf16>
    %c0_13 = arith.constant 0 : index
    %c0_14 = arith.constant 0 : index
    %18 = vector.load %arg6[%c0_13, %c0_14] : memref<128x128xbf16, #tpu.memory_space<vmem>>, vector<128x128xbf16>
    %cst_15 = arith.constant dense<0.000000e+00> : vector<8x128xf32>
    %19 = tpu.matmul %17, %18, %cst_15 {dimension_numbers = #tpu.dot_dimension_numbers<[1], [0], [0], [1], [0, 0, 1, 1], [], []>} : vector<8x128xbf16>, vector<128x128xbf16>, vector<8x128xf32> -> vector<8x128xf32>
    %c0_16 = arith.constant 0 : index
    %c0_17 = arith.constant 0 : index
    %20 = vector.load %arg7[%c0_16, %c0_17] : memref<1x128xf32, #tpu.memory_space<vmem>>, vector<1x128xf32>
    %21 = vector.broadcast %20 : vector<1x128xf32> to vector<8x128xf32>
    %22 = arith.addf %19, %21 : vector<8x128xf32>
    %cst_18 = arith.constant 0.000000e+00 : f32
    %23 = vector.broadcast %cst_18 : f32 to vector<8x128xf32>
    %24 = arith.maximumf %22, %23 : vector<8x128xf32>
    %25 = arith.truncf %24 : vector<8x128xf32> to vector<8x128xbf16>
    %c0_19 = arith.constant 0 : index
    %c0_20 = arith.constant 0 : index
    %26 = vector.load %arg8[%c0_19, %c0_20] : memref<128x128xbf16, #tpu.memory_space<vmem>>, vector<128x128xbf16>
    %cst_21 = arith.constant dense<0.000000e+00> : vector<8x128xf32>
    %27 = tpu.matmul %25, %26, %cst_21 {dimension_numbers = #tpu.dot_dimension_numbers<[1], [0], [0], [1], [0, 0, 1, 1], [], []>} : vector<8x128xbf16>, vector<128x128xbf16>, vector<8x128xf32> -> vector<8x128xf32>
    %c0_22 = arith.constant 0 : index
    %c0_23 = arith.constant 0 : index
    %28 = vector.load %arg9[%c0_22, %c0_23] : memref<1x128xf32, #tpu.memory_space<vmem>>, vector<1x128xf32>
    %29 = vector.broadcast %28 : vector<1x128xf32> to vector<8x128xf32>
    %30 = arith.addf %27, %29 : vector<8x128xf32>
    %31 = arith.truncf %30 : vector<8x128xf32> to vector<8x128xbf16>
    %c0_24 = arith.constant 0 : index
    %c0_25 = arith.constant 0 : index
    %32 = vector.load %arg10[%c0_24, %c0_25] : memref<8x128xbf16, #tpu.memory_space<vmem>>, vector<8x128xbf16>
    tpu.vector_store %arg10[%c0_24, %c0_25], %31 {strides = array<i32>} : memref<8x128xbf16, #tpu.memory_space<vmem>>, vector<8x128xbf16>,
    return
  }
  func.func @transform_0(%arg0: i32) -> (i32, i32) {
    %c0_i32 = arith.constant 0 : i32
    %c0_i32_0 = arith.constant 0 : i32
    return %arg0, %c0_i32 : i32, i32
  }
  func.func @transform_1(%arg0: i32) -> (i32, i32) {
    %c0_i32 = arith.constant 0 : i32
    %c0_i32_0 = arith.constant 0 : i32
    %c0_i32_1 = arith.constant 0 : i32
    return %c0_i32, %c0_i32_0 : i32, i32
  }
  func.func @transform_2(%arg0: i32) -> (i32, i32) {
    %c0_i32 = arith.constant 0 : i32
    %c0_i32_0 = arith.constant 0 : i32
    %c0_i32_1 = arith.constant 0 : i32
    return %c0_i32, %c0_i32_0 : i32, i32
  }
  func.func @transform_3(%arg0: i32) -> (i32, i32) {
    %c0_i32 = arith.constant 0 : i32
    %c0_i32_0 = arith.constant 0 : i32
    %c0_i32_1 = arith.constant 0 : i32
    return %c0_i32, %c0_i32_0 : i32, i32
  }
  func.func @transform_4(%arg0: i32) -> (i32, i32) {
    %c0_i32 = arith.constant 0 : i32
    %c0_i32_0 = arith.constant 0 : i32
    %c0_i32_1 = arith.constant 0 : i32
    return %c0_i32, %c0_i32_0 : i32, i32
  }
  func.func @transform_5(%arg0: i32) -> (i32, i32) {
    %c0_i32 = arith.constant 0 : i32
    %c0_i32_0 = arith.constant 0 : i32
    %c0_i32_1 = arith.constant 0 : i32
    return %c0_i32, %c0_i32_0 : i32, i32
  }
  func.func @transform_6(%arg0: i32) -> (i32, i32) {
    %c0_i32 = arith.constant 0 : i32
    %c0_i32_0 = arith.constant 0 : i32
    %c0_i32_1 = arith.constant 0 : i32
    return %c0_i32, %c0_i32_0 : i32, i32
  }
  func.func @transform_7(%arg0: i32) -> (i32, i32) {
    %c0_i32 = arith.constant 0 : i32
    %c0_i32_0 = arith.constant 0 : i32
    %c0_i32_1 = arith.constant 0 : i32
    return %c0_i32, %c0_i32_0 : i32, i32
  }
  func.func @transform_8(%arg0: i32) -> (i32, i32) {
    %c0_i32 = arith.constant 0 : i32
    %c0_i32_0 = arith.constant 0 : i32
    %c0_i32_1 = arith.constant 0 : i32
    return %c0_i32, %c0_i32_0 : i32, i32
  }
  func.func @transform_9(%arg0: i32) -> (i32, i32) {
    %c0_i32 = arith.constant 0 : i32
    %c0_i32_0 = arith.constant 0 : i32
    return %arg0, %c0_i32 : i32, i32
  }
  func.func @transform_10(%arg0: i32) -> (i32, i32) {
    %c0_i32 = arith.constant 0 : i32
    %c0_i32_0 = arith.constant 0 : i32
    return %arg0, %c0_i32 : i32, i32
  }
}

module attributes {stable_mosaic.version = 11 : i64} {
  func.func @_rib_fused_kernel(%arg0: i32, %arg1: memref<8x32xf32, #tpu.memory_space<vmem>>, %arg2: memref<32x128xbf16, #tpu.memory_space<vmem>>, %arg3: memref<1x128xf32, #tpu.memory_space<vmem>>, %arg4: memref<128x128xbf16, #tpu.memory_space<vmem>>, %arg5: memref<1x128xf32, #tpu.memory_space<vmem>>, %arg6: memref<128x128xbf16, #tpu.memory_space<vmem>>, %arg7: memref<1x128xf32, #tpu.memory_space<vmem>>, %arg8: memref<128x128xbf16, #tpu.memory_space<vmem>>, %arg9: memref<1x128xf32, #tpu.memory_space<vmem>>, %arg10: memref<8x128xbf16, #tpu.memory_space<vmem>>, %arg11: memref<8x128xbf16, #tpu.memory_space<vmem>>) attributes {dimension_semantics = [#tpu.dimension_semantics<parallel>], iteration_bounds = array<i64: 1>, scalar_prefetch = 0 : i64, scratch_operands = 0 : i64, tpu.core_type = #tpu.core_type<tc>, window_params = [{transform_indices = @transform_0, window_bounds = array<i64: 8, 32>}, {pipeline_mode = #tpu.pipeline_mode<synchronous>, transform_indices = @transform_1, window_bounds = array<i64: 32, 128>}, {pipeline_mode = #tpu.pipeline_mode<synchronous>, transform_indices = @transform_2, window_bounds = array<i64: 1, 128>}, {pipeline_mode = #tpu.pipeline_mode<synchronous>, transform_indices = @transform_3, window_bounds = array<i64: 128, 128>}, {pipeline_mode = #tpu.pipeline_mode<synchronous>, transform_indices = @transform_4, window_bounds = array<i64: 1, 128>}, {pipeline_mode = #tpu.pipeline_mode<synchronous>, transform_indices = @transform_5, window_bounds = array<i64: 128, 128>}, {pipeline_mode = #tpu.pipeline_mode<synchronous>, transform_indices = @transform_6, window_bounds = array<i64: 1, 128>}, {pipeline_mode = #tpu.pipeline_mode<synchronous>, transform_indices = @transform_7, window_bounds = array<i64: 128, 128>}, {pipeline_mode = #tpu.pipeline_mode<synchronous>, transform_indices = @transform_8, window_bounds = array<i64: 1, 128>}, {transform_indices = @transform_9, window_bounds = array<i64: 8, 128>}, {transform_indices = @transform_10, window_bounds = array<i64: 8, 128>}]} {
    %c0 = arith.constant 0 : index
    %c0_0 = arith.constant 0 : index
    %0 = vector.load %arg1[%c0, %c0_0] : memref<8x32xf32, #tpu.memory_space<vmem>>, vector<8x32xf32>
    %1 = arith.truncf %0 : vector<8x32xf32> to vector<8x32xbf16>
    %c0_1 = arith.constant 0 : index
    %c0_2 = arith.constant 0 : index
    %2 = vector.load %arg2[%c0_1, %c0_2] : memref<32x128xbf16, #tpu.memory_space<vmem>>, vector<32x128xbf16>
    %cst = arith.constant dense<0.000000e+00> : vector<8x128xf32>
    %3 = tpu.matmul %1, %2, %cst {dimension_numbers = #tpu.dot_dimension_numbers<[1], [0], [0], [1], [0, 0, 1, 1], [], []>} : vector<8x32xbf16>, vector<32x128xbf16>, vector<8x128xf32> -> vector<8x128xf32>
    %c0_3 = arith.constant 0 : index
    %c0_4 = arith.constant 0 : index
    %4 = vector.load %arg3[%c0_3, %c0_4] : memref<1x128xf32, #tpu.memory_space<vmem>>, vector<1x128xf32>
    %5 = vector.broadcast %4 : vector<1x128xf32> to vector<8x128xf32>
    %6 = arith.addf %3, %5 : vector<8x128xf32>
    %cst_5 = arith.constant 0.000000e+00 : f32
    %7 = vector.broadcast %cst_5 : f32 to vector<8x128xf32>
    %8 = arith.maximumf %6, %7 : vector<8x128xf32>
    %9 = arith.truncf %8 : vector<8x128xf32> to vector<8x128xbf16>
    %c0_6 = arith.constant 0 : index
    %c0_7 = arith.constant 0 : index
    %10 = vector.load %arg4[%c0_6, %c0_7] : memref<128x128xbf16, #tpu.memory_space<vmem>>, vector<128x128xbf16>
    %cst_8 = arith.constant dense<0.000000e+00> : vector<8x128xf32>
    %11 = tpu.matmul %9, %10, %cst_8 {dimension_numbers = #tpu.dot_dimension_numbers<[1], [0], [0], [1], [0, 0, 1, 1], [], []>} : vector<8x128xbf16>, vector<128x128xbf16>, vector<8x128xf32> -> vector<8x128xf32>
    %c0_9 = arith.constant 0 : index
    %c0_10 = arith.constant 0 : index
    %12 = vector.load %arg5[%c0_9, %c0_10] : memref<1x128xf32, #tpu.memory_space<vmem>>, vector<1x128xf32>
    %13 = vector.broadcast %12 : vector<1x128xf32> to vector<8x128xf32>
    %14 = arith.addf %11, %13 : vector<8x128xf32>
    %15 = arith.truncf %14 : vector<8x128xf32> to vector<8x128xbf16>
    %c0_11 = arith.constant 0 : index
    %c0_12 = arith.constant 0 : index
    %16 = vector.load %arg11[%c0_11, %c0_12] : memref<8x128xbf16, #tpu.memory_space<vmem>>, vector<8x128xbf16>
    tpu.vector_store %arg11[%c0_11, %c0_12], %15 {strides = array<i32>} : memref<8x128xbf16, #tpu.memory_space<vmem>>, vector<8x128xbf16>,
    %17 = arith.truncf %14 : vector<8x128xf32> to vector<8x128xbf16>
    %c0_13 = arith.constant 0 : index
    %c0_14 = arith.constant 0 : index
    %18 = vector.load %arg6[%c0_13, %c0_14] : memref<128x128xbf16, #tpu.memory_space<vmem>>, vector<128x128xbf16>
    %cst_15 = arith.constant dense<0.000000e+00> : vector<8x128xf32>
    %19 = tpu.matmul %17, %18, %cst_15 {dimension_numbers = #tpu.dot_dimension_numbers<[1], [0], [0], [1], [0, 0, 1, 1], [], []>} : vector<8x128xbf16>, vector<128x128xbf16>, vector<8x128xf32> -> vector<8x128xf32>
    %c0_16 = arith.constant 0 : index
    %c0_17 = arith.constant 0 : index
    %20 = vector.load %arg7[%c0_16, %c0_17] : memref<1x128xf32, #tpu.memory_space<vmem>>, vector<1x128xf32>
    %21 = vector.broadcast %20 : vector<1x128xf32> to vector<8x128xf32>
    %22 = arith.addf %19, %21 : vector<8x128xf32>
    %cst_18 = arith.constant 0.000000e+00 : f32
    %23 = vector.broadcast %cst_18 : f32 to vector<8x128xf32>
    %24 = arith.maximumf %22, %23 : vector<8x128xf32>
    %25 = arith.truncf %24 : vector<8x128xf32> to vector<8x128xbf16>
    %c0_19 = arith.constant 0 : index
    %c0_20 = arith.constant 0 : index
    %26 = vector.load %arg8[%c0_19, %c0_20] : memref<128x128xbf16, #tpu.memory_space<vmem>>, vector<128x128xbf16>
    %cst_21 = arith.constant dense<0.000000e+00> : vector<8x128xf32>
    %27 = tpu.matmul %25, %26, %cst_21 {dimension_numbers = #tpu.dot_dimension_numbers<[1], [0], [0], [1], [0, 0, 1, 1], [], []>} : vector<8x128xbf16>, vector<128x128xbf16>, vector<8x128xf32> -> vector<8x128xf32>
    %c0_22 = arith.constant 0 : index
    %c0_23 = arith.constant 0 : index
    %28 = vector.load %arg9[%c0_22, %c0_23] : memref<1x128xf32, #tpu.memory_space<vmem>>, vector<1x128xf32>
    %29 = vector.broadcast %28 : vector<1x128xf32> to vector<8x128xf32>
    %30 = arith.addf %27, %29 : vector<8x128xf32>
    %31 = arith.truncf %30 : vector<8x128xf32> to vector<8x128xbf16>
    %c0_24 = arith.constant 0 : index
    %c0_25 = arith.constant 0 : index
    %32 = vector.load %arg10[%c0_24, %c0_25] : memref<8x128xbf16, #tpu.memory_space<vmem>>, vector<8x128xbf16>
    tpu.vector_store %arg10[%c0_24, %c0_25], %31 {strides = array<i32>} : memref<8x128xbf16, #tpu.memory_space<vmem>>, vector<8x128xbf16>,
    return
  }
  func.func @transform_0(%arg0: i32) -> (i32, i32) {
    %c0_i32 = arith.constant 0 : i32
    %c0_i32_0 = arith.constant 0 : i32
    return %arg0, %c0_i32 : i32, i32
  }
  func.func @transform_1(%arg0: i32) -> (i32, i32) {
    %c0_i32 = arith.constant 0 : i32
    %c0_i32_0 = arith.constant 0 : i32
    %c0_i32_1 = arith.constant 0 : i32
    return %c0_i32, %c0_i32_0 : i32, i32
  }
  func.func @transform_2(%arg0: i32) -> (i32, i32) {
    %c0_i32 = arith.constant 0 : i32
    %c0_i32_0 = arith.constant 0 : i32
    %c0_i32_1 = arith.constant 0 : i32
    return %c0_i32, %c0_i32_0 : i32, i32
  }
  func.func @transform_3(%arg0: i32) -> (i32, i32) {
    %c0_i32 = arith.constant 0 : i32
    %c0_i32_0 = arith.constant 0 : i32
    %c0_i32_1 = arith.constant 0 : i32
    return %c0_i32, %c0_i32_0 : i32, i32
  }
  func.func @transform_4(%arg0: i32) -> (i32, i32) {
    %c0_i32 = arith.constant 0 : i32
    %c0_i32_0 = arith.constant 0 : i32
    %c0_i32_1 = arith.constant 0 : i32
    return %c0_i32, %c0_i32_0 : i32, i32
  }
  func.func @transform_5(%arg0: i32) -> (i32, i32) {
    %c0_i32 = arith.constant 0 : i32
    %c0_i32_0 = arith.constant 0 : i32
    %c0_i32_1 = arith.constant 0 : i32
    return %c0_i32, %c0_i32_0 : i32, i32
  }
  func.func @transform_6(%arg0: i32) -> (i32, i32) {
    %c0_i32 = arith.constant 0 : i32
    %c0_i32_0 = arith.constant 0 : i32
    %c0_i32_1 = arith.constant 0 : i32
    return %c0_i32, %c0_i32_0 : i32, i32
  }
  func.func @transform_7(%arg0: i32) -> (i32, i32) {
    %c0_i32 = arith.constant 0 : i32
    %c0_i32_0 = arith.constant 0 : i32
    %c0_i32_1 = arith.constant 0 : i32
    return %c0_i32, %c0_i32_0 : i32, i32
  }
  func.func @transform_8(%arg0: i32) -> (i32, i32) {
    %c0_i32 = arith.constant 0 : i32
    %c0_i32_0 = arith.constant 0 : i32
    %c0_i32_1 = arith.constant 0 : i32
    return %c0_i32, %c0_i32_0 : i32, i32
  }
  func.func @transform_9(%arg0: i32) -> (i32, i32) {
    %c0_i32 = arith.constant 0 : i32
    %c0_i32_0 = arith.constant 0 : i32
    return %arg0, %c0_i32 : i32, i32
  }
  func.func @transform_10(%arg0: i32) -> (i32, i32) {
    %c0_i32 = arith.constant 0 : i32
    %c0_i32_0 = arith.constant 0 : i32
    return %arg0, %c0_i32 : i32, i32
  }
}

</mosaic_0001>

<bundles_post_ra>
// kernel: tpu_custom_call.1
= control target key start
LH: loop header
LB: loop body
LE: loop exit
PB: predicated region body
PF: predicated region fallthrough
CT: control target
= control target key end

     0   :  { %16 = vsyncpa [#allocation3], 0  ;;  %s857_s0 = inlined_call_operand.hbm [shape: f32[8,32], index: 0, kind: input, shape index: {}]   ;;  %s858_s1 = inlined_call_operand.hbm [shape: bf16[32,128], index: 1, kind: input, shape index: {}]   ;;  %s859_s2 = inlined_call_operand.vmem [shape: f32[1,128], index: 2, kind: input, shape index: {}]   ;;  %s860_s3 = inlined_call_operand.hbm [shape: bf16[128,128], index: 3, kind: input, shape index: {}]   ;;  %s861_s4 = inlined_call_operand.vmem [shape: f32[1,128], index: 4, kind: input, shape index: {}]   ;;  %s862_s5 = inlined_call_operand.hbm [shape: bf16[128,128], index: 5, kind: input, shape index: {}]   ;;  %s863_s6 = inlined_call_operand.vmem [shape: f32[1,128], index: 6, kind: input, shape index: {}]   ;;  %s864_s7 = inlined_call_operand.hbm [shape: bf16[128,128], index: 7, kind: input, shape index: {}]   ;;  %s865_s8 = inlined_call_operand.vmem [shape: f32[1,128], index: 8, kind: input, shape index: {}]   ;;  %s866_s9 = inlined_call_operand.hbm [shape: bf16[8,128], index: 9, kind: output, shape index: {0}]   ;;  %s867_s10 = inlined_call_operand.hbm [shape: bf16[8,128], index: 10, kind: output, shape index: {1}]  }
   0x1   :  { %17 = vsyncpa [#allocation6], 0 }
   0x2   :  { %18 = vsyncpa [#allocation9], 0 }
   0x3   :  { %19 = vsyncpa [#allocation4], 0  ;;  %s36_s15 = sshll.u32 %s858_s1, 4  ;;  %s37_s15 = int_to_ptr.hbm [resolvable:$true] %s36_s15 }
   0x4   :  { %20 = vsyncpa [#allocation13], 0  ;;  %s760_s16 = smov [#allocation5]   ;;  %s66_s20 = sshll.u32 %s862_s5, 4  ;;  %s67_s20 = int_to_ptr.hbm [resolvable:$true] %s66_s20 }
   0x5   :  { %s38_s17 = sshll.u32 %s760_s16, 4  ;;  %s761_s21 = smov 64   ;;  %s39_s17 = int_to_ptr.vmem [resolvable:$true] %s38_s17 }
   0x6   :  { %s762_s22 = smov 4   ;;  %s763_s23 = smov [#allocation8]  }
   0x7   :  { %44 = dma.hbm_to_vmem [thread:$0]  %s37_s15, 256, %s39_s17, [#allocation6], %s761_s21, %s761_s21, %s762_s22  }
   0x8   :  { %s68_s24 = sshll.u32 %s763_s23, 4  ;;  %s26_s27 = sshll.u32 %s857_s0, 4  ;;  %s69_s24 = int_to_ptr.vmem [resolvable:$true] %s68_s24  ;;  %s27_s27 = int_to_ptr.hbm [resolvable:$true] %s26_s27 }
   0x9   :  { %74 = dma.hbm_to_vmem [thread:$0]  %s67_s20, 1024, %s69_s24, [#allocation9], %s761_s21, %s761_s21, %s762_s22  }
   0xa   :  { %s51_s29 = sshll.u32 %s860_s3, 4  ;;  %s764_s30 = smov [#allocation2]   ;;  %s52_s29 = int_to_ptr.hbm [resolvable:$true] %s51_s29 }
   0xb   :  { %s28_s11 = sshll.u32 %s764_s30, 4  ;;  %s765_s5 = smov [#allocation7]   ;;  %s29_s11 = int_to_ptr.vmem [resolvable:$true] %s28_s11 }
   0xc   :  { %31 = dma.hbm_to_vmem [thread:$0]  %s27_s27, 128, %s29_s11, [#allocation3]  }
   0xd   :  { %s53_s12 = sshll.u32 %s765_s5, 4  ;;  %s81_s15 = sshll.u32 %s864_s7, 4  ;;  %s54_s12 = int_to_ptr.vmem [resolvable:$true] %s53_s12  ;;  %s82_s15 = int_to_ptr.hbm [resolvable:$true] %s81_s15 }
   0xe   :  { %59 = dma.hbm_to_vmem [thread:$0]  %s52_s29, 1024, %s54_s12, [#allocation6], %s761_s21, %s761_s21, %s762_s22  }
   0xf   :  { %s766_s0 = smov [#allocation10]  }
  0x10   :  { %s83_s16 = sshll.u32 %s766_s0, 4  ;;  %s84_s16 = int_to_ptr.vmem [resolvable:$true] %s83_s16 }
  0x11   :  { %89 = dma.hbm_to_vmem [thread:$0]  %s82_s15, 1024, %s84_s16, [#allocation9], %s761_s21, %s761_s21, %s762_s22  }
  0x12   :  { %750 = dma.done.wait [#allocation3], 128  }
  0x13   :  { %751 = vsyncadd [#allocation3], 4294967168 }
  0x14   :  { %752 = dma.done.wait [#allocation6], 1280  }
  0x15   :  { %753 = vsyncadd [#allocation6], 4294966016 }
  0x16   :  { %754 = dma.done.wait [#allocation9], 2048  }
  0x17   :  { %755 = vsyncadd [#allocation9], 4294965248  ;;  %v544_v0 = vld [vmem:[#allocation5 + $0x8] sm:$0xff]  ;;  %v543_v2 = vld [vmem:[#allocation5] sm:$0xff]  ;;  %vm135_vm0 = vcmask 261120   ;;  %s421_s23 = sshll.u32 %s867_s10, 4  ;;  %s422_s23 = int_to_ptr.hbm [resolvable:$true] %s421_s23 }
  0x18   :  { %v552_v1 = vld [vmem:[#allocation7 + $0x38] sm:$0xff]  ;;  %145 = vmatpush.bf16.msra.mxu0 %v544_v0  ;;  %v113_v3 = vld [vmem:[#allocation2] sm:$0xff]  ;;  %v551_v4 = vld [vmem:[#allocation7 + $0x30] sm:$0xff]  ;;  %s410_s28 = sshll.u32 %s866_s9, 4  ;;  %s411_s28 = int_to_ptr.hbm [resolvable:$true] %s410_s28 }
  0x19   :  { %222 = vmatpush.bf16.msra.mxu1 %v552_v1  ;;  %v114_v5 = vpack.c.bf16 %v113_v3, %v113_v3  ;;  %v550_v6 = vld [vmem:[#allocation7 + $0x28] sm:$0xff]  ;;  %v549_v7 = vld [vmem:[#allocation7 + $0x20] sm:$0xff]  ;;  %v548_v8 = vld [vmem:[#allocation7 + $0x18] sm:$0xff] }
  0x1a   :  { %v547_v9 = vld [vmem:[#allocation7 + $0x10] sm:$0xff]  ;;  %v546_v10 = vld [vmem:[#allocation7 + $0x8] sm:$0xff]  ;;  %v545_v11 = vld [vmem:[#allocation7] sm:$0xff] }
  0x1b   :  { %v560_v12 = vld [vmem:[#allocation8 + $0x38] sm:$0xff]  ;;  %v559_v13 = vld [vmem:[#allocation8 + $0x30] sm:$0xff]  ;;  %v558_v14 = vld [vmem:[#allocation8 + $0x28] sm:$0xff] }
  0x1c   :  { %146 = vmatpush.bf16.msra.mxu0 %v543_v2  ;;  %305 = vmatpush.bf16.msra.mxu2 %v560_v12  ;;  %v557_v15 = vld [vmem:[#allocation8 + $0x20] sm:$0xff]  ;;  %v556_v16 = vld [vmem:[#allocation8 + $0x18] sm:$0xff]  ;;  %v555_v17 = vld [vmem:[#allocation8 + $0x10] sm:$0xff] }
  0x1d   :  { %223 = vmatpush.bf16.msra.mxu1 %v551_v4  ;;  %v578_v18 = vld [vmem:[%s859_s2] ss:$0 sm:$0xff]  ;;  %v553_v25 = vld [vmem:[#allocation8] sm:$0xff]  ;;  %v568_v26 = vld [vmem:[#allocation10 + $0x38] sm:$0xff] }
  0x1e   :  { %v554_v19 = vld [vmem:[#allocation8 + $0x8] sm:$0xff]  ;;  %388 = vmatpush.bf16.msra.mxu3 %v568_v26  ;;  %v567_v27 = vld [vmem:[#allocation10 + $0x30] sm:$0xff]  ;;  %v565_v29 = vld [vmem:[#allocation10 + $0x20] sm:$0xff] }
  0x1f   :  { %446 = vmatmul.msk.bf16.vlgmr.msra.gmra.mxu0 %vm135_vm0, %v114_v5  ;;  %v566_v28 = vld [vmem:[#allocation10 + $0x28] sm:$0xff]  ;;  %v564_v30 = vld [vmem:[#allocation10 + $0x18] sm:$0xff]  ;;  %v563_v31 = vld [vmem:[#allocation10 + $0x10] sm:$0xff] }
  0x20   :  { %306 = vmatpush.bf16.msra.mxu2 %v559_v13  ;;  %v579_v32 = vld [vmem:[%s861_s4] ss:$0 sm:$0xff]  ;;  %v561_v38 = vld [vmem:[#allocation10] sm:$0xff]  ;;  %s767_s4 = smov [#allocation12]  }
  0x21   :  { %224 = vmatpush.bf16.msra.mxu1 %v550_v6  ;;  %v562_v37 = vld [vmem:[#allocation10 + $0x8] sm:$0xff]  ;;  %s419_s20 = sshll.u32 %s767_s4, 4  ;;  %s420_s20 = int_to_ptr.vmem [resolvable:$true] %s419_s20 }
  0x22   :  { %389 = vmatpush.bf16.msra.mxu3 %v567_v27  ;;  %v580_v39 = vld [vmem:[%s863_s6] ss:$0 sm:$0xff]  ;;  %s768_s6 = smov [#allocation11]  }
  0x23   :  { %v581_v45 = vld [vmem:[%s865_s8] ss:$0 sm:$0xff]  ;;  %s408_s26 = sshll.u32 %s768_s6, 4  ;;  %s409_s26 = int_to_ptr.vmem [resolvable:$true] %s408_s26 }
  0x24   :  { %307 = vmatpush.bf16.msra.mxu2 %v558_v14 }
  0x25   :  { %225 = vmatpush.bf16.msra.mxu1 %v549_v7 }
  0x26   :  { %390 = vmatpush.bf16.msra.mxu3 %v566_v28 }
  0x28   :  { %308 = vmatpush.bf16.msra.mxu2 %v557_v15 }
  0x29   :  { %226 = vmatpush.bf16.msra.mxu1 %v548_v8 }
  0x2a   :  { %391 = vmatpush.bf16.msra.mxu3 %v565_v29 }
  0x2c   :  { %309 = vmatpush.bf16.msra.mxu2 %v556_v16 }
  0x2d   :  { %227 = vmatpush.bf16.msra.mxu1 %v547_v9 }
  0x2e   :  { %392 = vmatpush.bf16.msra.mxu3 %v564_v30 }
  0x30   :  { %310 = vmatpush.bf16.msra.mxu2 %v555_v17 }
  0x31   :  { %228 = vmatpush.bf16.msra.mxu1 %v546_v10 }
  0x32   :  { %393 = vmatpush.bf16.msra.mxu3 %v563_v31 }
  0x34   :  { %311 = vmatpush.bf16.msra.mxu2 %v554_v19 }
  0x35   :  { %229 = vmatpush.bf16.msra.mxu1 %v545_v11 }
  0x36   :  { %394 = vmatpush.bf16.msra.mxu3 %v562_v37 }
  0x38   :  { %312 = vmatpush.bf16.msra.mxu2 %v553_v25 }
  0x3a   :  { %395 = vmatpush.bf16.msra.mxu3 %v561_v38 }
  0x9c   :  { %v148_v20 = vpop.f32.mrf.mxu0 }
  0x9d   :  { %v149_v21 = vadd.f32 %v578_v18, %v148_v20 }
  0x9f   :  { %v152_v22 = vmax.f32 %v149_v21, 0.0 }
  0xa1   :  { %v153_v23 = vpack.c.bf16 %v152_v22, %v152_v22 }
  0xa3   :  { %230 = vmatmul.bf16.vlgmr.msra.gmra.mxu1 %v153_v23 }
  0xa4   :  { %v150_v24 = vpop.f32.mrf.mxu0 }
 0x120   :  { %v231_v33 = vpop.f32.mrf.mxu1 }
 0x121   :  { %v232_v34 = vadd.f32 %v579_v32, %v231_v33 }
 0x123   :  { %v235_v35 = vpack.c.bf16 %v232_v34, %v232_v34 }
 0x125   :  { %236 = vst [vmem:[#allocation12] sm:$0xf] %v235_v35  ;;  %313 = vmatmul.bf16.vlgmr.msra.gmra.mxu2 %v235_v35 }
 0x126   :  { %424 = dma.vmem_to_hbm [thread:$0]  %s420_s20, 64, %s422_s23, [#allocation13]  }
 0x128   :  { %v233_v36 = vpop.f32.mrf.mxu1 }
 0x1a8   :  { %v314_v40 = vpop.f32.mrf.mxu2 }
 0x1a9   :  { %v315_v41 = vadd.f32 %v580_v39, %v314_v40 }
 0x1ab   :  { %v318_v42 = vmax.f32 %v315_v41, 0.0 }
 0x1ad   :  { %v319_v43 = vpack.c.bf16 %v318_v42, %v318_v42 }
 0x1af   :  { %396 = vmatmul.bf16.vlgmr.msra.gmra.mxu3 %v319_v43 }
 0x1b0   :  { %v316_v44 = vpop.f32.mrf.mxu2 }
 0x232   :  { %v397_v46 = vpop.f32.mrf.mxu3 }
 0x233   :  { %v398_v47 = vadd.f32 %v581_v45, %v397_v46 }
 0x235   :  { %v401_v48 = vpack.c.bf16 %v398_v47, %v398_v47 }
 0x237   :  { %402 = vst [vmem:[#allocation11] sm:$0xf] %v401_v48 }
 0x238   :  { %413 = dma.vmem_to_hbm [thread:$0]  %s409_s26, 64, %s411_s28, [#allocation4]  }
 0x23a   :  { %v399_v49 = vpop.f32.mrf.mxu3 }
 0x23b   :  { %756 = dma.done.wait [#allocation4], 64  }
 0x23c   :  { %757 = vsyncadd [#allocation4], 4294967232 }
 0x23d   :  { %758 = dma.done.wait [#allocation13], 64  }
 0x23e   :  { %759 = vsyncadd [#allocation13], 4294967232 }
 0x23f   :  { %433 = vsyncpa [#allocation3], 1 }
 0x240   :  { %434 = vsyncpa [#allocation6], 1 }
 0x241   :  { %435 = vsyncpa [#allocation9], 1 }
 0x242   :  { %436 = vsyncpa [#allocation4], 1 }
 0x243   :  { %437 = vsyncpa [#allocation13], 1 }

// kernel: tpu_custom_call.1
= control target key start
LH: loop header
LB: loop body
LE: loop exit
PB: predicated region body
PF: predicated region fallthrough
CT: control target
= control target key end

     0   :  { %16 = vsyncpa [#allocation3], 0  ;;  %s857_s0 = inlined_call_operand.hbm [shape: f32[8,32], index: 0, kind: input, shape index: {}]   ;;  %s858_s1 = inlined_call_operand.hbm [shape: bf16[32,128], index: 1, kind: input, shape index: {}]   ;;  %s859_s2 = inlined_call_operand.vmem [shape: f32[1,128], index: 2, kind: input, shape index: {}]   ;;  %s860_s3 = inlined_call_operand.hbm [shape: bf16[128,128], index: 3, kind: input, shape index: {}]   ;;  %s861_s4 = inlined_call_operand.vmem [shape: f32[1,128], index: 4, kind: input, shape index: {}]   ;;  %s862_s5 = inlined_call_operand.hbm [shape: bf16[128,128], index: 5, kind: input, shape index: {}]   ;;  %s863_s6 = inlined_call_operand.vmem [shape: f32[1,128], index: 6, kind: input, shape index: {}]   ;;  %s864_s7 = inlined_call_operand.hbm [shape: bf16[128,128], index: 7, kind: input, shape index: {}]   ;;  %s865_s8 = inlined_call_operand.vmem [shape: f32[1,128], index: 8, kind: input, shape index: {}]   ;;  %s866_s9 = inlined_call_operand.hbm [shape: bf16[8,128], index: 9, kind: output, shape index: {0}]   ;;  %s867_s10 = inlined_call_operand.hbm [shape: bf16[8,128], index: 10, kind: output, shape index: {1}]  }
   0x1   :  { %17 = vsyncpa [#allocation6], 0 }
   0x2   :  { %18 = vsyncpa [#allocation9], 0 }
   0x3   :  { %19 = vsyncpa [#allocation4], 0  ;;  %s36_s15 = sshll.u32 %s858_s1, 4  ;;  %s37_s15 = int_to_ptr.hbm [resolvable:$true] %s36_s15 }
   0x4   :  { %20 = vsyncpa [#allocation13], 0  ;;  %s760_s16 = smov [#allocation5]   ;;  %s66_s20 = sshll.u32 %s862_s5, 4  ;;  %s67_s20 = int_to_ptr.hbm [resolvable:$true] %s66_s20 }
   0x5   :  { %s38_s17 = sshll.u32 %s760_s16, 4  ;;  %s761_s21 = smov 64   ;;  %s39_s17 = int_to_ptr.vmem [resolvable:$true] %s38_s17 }
   0x6   :  { %s762_s22 = smov 4   ;;  %s763_s23 = smov [#allocation8]  }
   0x7   :  { %44 = dma.hbm_to_vmem [thread:$0]  %s37_s15, 256, %s39_s17, [#allocation6], %s761_s21, %s761_s21, %s762_s22  }
   0x8   :  { %s68_s24 = sshll.u32 %s763_s23, 4  ;;  %s26_s27 = sshll.u32 %s857_s0, 4  ;;  %s69_s24 = int_to_ptr.vmem [resolvable:$true] %s68_s24  ;;  %s27_s27 = int_to_ptr.hbm [resolvable:$true] %s26_s27 }
   0x9   :  { %74 = dma.hbm_to_vmem [thread:$0]  %s67_s20, 1024, %s69_s24, [#allocation9], %s761_s21, %s761_s21, %s762_s22  }
   0xa   :  { %s51_s29 = sshll.u32 %s860_s3, 4  ;;  %s764_s30 = smov [#allocation2]   ;;  %s52_s29 = int_to_ptr.hbm [resolvable:$true] %s51_s29 }
   0xb   :  { %s28_s11 = sshll.u32 %s764_s30, 4  ;;  %s765_s5 = smov [#allocation7]   ;;  %s29_s11 = int_to_ptr.vmem [resolvable:$true] %s28_s11 }
   0xc   :  { %31 = dma.hbm_to_vmem [thread:$0]  %s27_s27, 128, %s29_s11, [#allocation3]  }
   0xd   :  { %s53_s12 = sshll.u32 %s765_s5, 4  ;;  %s81_s15 = sshll.u32 %s864_s7, 4  ;;  %s54_s12 = int_to_ptr.vmem [resolvable:$true] %s53_s12  ;;  %s82_s15 = int_to_ptr.hbm [resolvable:$true] %s81_s15 }
   0xe   :  { %59 = dma.hbm_to_vmem [thread:$0]  %s52_s29, 1024, %s54_s12, [#allocation6], %s761_s21, %s761_s21, %s762_s22  }
   0xf   :  { %s766_s0 = smov [#allocation10]  }
  0x10   :  { %s83_s16 = sshll.u32 %s766_s0, 4  ;;  %s84_s16 = int_to_ptr.vmem [resolvable:$true] %s83_s16 }
  0x11   :  { %89 = dma.hbm_to_vmem [thread:$0]  %s82_s15, 1024, %s84_s16, [#allocation9], %s761_s21, %s761_s21, %s762_s22  }
  0x12   :  { %750 = dma.done.wait [#allocation3], 128  }
  0x13   :  { %751 = vsyncadd [#allocation3], 4294967168 }
  0x14   :  { %752 = dma.done.wait [#allocation6], 1280  }
  0x15   :  { %753 = vsyncadd [#allocation6], 4294966016 }
  0x16   :  { %754 = dma.done.wait [#allocation9], 2048  }
  0x17   :  { %755 = vsyncadd [#allocation9], 4294965248  ;;  %v544_v0 = vld [vmem:[#allocation5 + $0x8] sm:$0xff]  ;;  %v543_v2 = vld [vmem:[#allocation5] sm:$0xff]  ;;  %vm135_vm0 = vcmask 261120   ;;  %s421_s23 = sshll.u32 %s867_s10, 4  ;;  %s422_s23 = int_to_ptr.hbm [resolvable:$true] %s421_s23 }
  0x18   :  { %v552_v1 = vld [vmem:[#allocation7 + $0x38] sm:$0xff]  ;;  %145 = vmatpush.bf16.msra.mxu0 %v544_v0  ;;  %v113_v3 = vld [vmem:[#allocation2] sm:$0xff]  ;;  %v551_v4 = vld [vmem:[#allocation7 + $0x30] sm:$0xff]  ;;  %s410_s28 = sshll.u32 %s866_s9, 4  ;;  %s411_s28 = int_to_ptr.hbm [resolvable:$true] %s410_s28 }
  0x19   :  { %222 = vmatpush.bf16.msra.mxu1 %v552_v1  ;;  %v114_v5 = vpack.c.bf16 %v113_v3, %v113_v3  ;;  %v550_v6 = vld [vmem:[#allocation7 + $0x28] sm:$0xff]  ;;  %v549_v7 = vld [vmem:[#allocation7 + $0x20] sm:$0xff]  ;;  %v548_v8 = vld [vmem:[#allocation7 + $0x18] sm:$0xff] }
  0x1a   :  { %v547_v9 = vld [vmem:[#allocation7 + $0x10] sm:$0xff]  ;;  %v546_v10 = vld [vmem:[#allocation7 + $0x8] sm:$0xff]  ;;  %v545_v11 = vld [vmem:[#allocation7] sm:$0xff] }
  0x1b   :  { %v560_v12 = vld [vmem:[#allocation8 + $0x38] sm:$0xff]  ;;  %v559_v13 = vld [vmem:[#allocation8 + $0x30] sm:$0xff]  ;;  %v558_v14 = vld [vmem:[#allocation8 + $0x28] sm:$0xff] }
  0x1c   :  { %146 = vmatpush.bf16.msra.mxu0 %v543_v2  ;;  %305 = vmatpush.bf16.msra.mxu2 %v560_v12  ;;  %v557_v15 = vld [vmem:[#allocation8 + $0x20] sm:$0xff]  ;;  %v556_v16 = vld [vmem:[#allocation8 + $0x18] sm:$0xff]  ;;  %v555_v17 = vld [vmem:[#allocation8 + $0x10] sm:$0xff] }
  0x1d   :  { %223 = vmatpush.bf16.msra.mxu1 %v551_v4  ;;  %v578_v18 = vld [vmem:[%s859_s2] ss:$0 sm:$0xff]  ;;  %v553_v25 = vld [vmem:[#allocation8] sm:$0xff]  ;;  %v568_v26 = vld [vmem:[#allocation10 + $0x38] sm:$0xff] }
  0x1e   :  { %v554_v19 = vld [vmem:[#allocation8 + $0x8] sm:$0xff]  ;;  %388 = vmatpush.bf16.msra.mxu3 %v568_v26  ;;  %v567_v27 = vld [vmem:[#allocation10 + $0x30] sm:$0xff]  ;;  %v565_v29 = vld [vmem:[#allocation10 + $0x20] sm:$0xff] }
  0x1f   :  { %446 = vmatmul.msk.bf16.vlgmr.msra.gmra.mxu0 %vm135_vm0, %v114_v5  ;;  %v566_v28 = vld [vmem:[#allocation10 + $0x28] sm:$0xff]  ;;  %v564_v30 = vld [vmem:[#allocation10 + $0x18] sm:$0xff]  ;;  %v563_v31 = vld [vmem:[#allocation10 + $0x10] sm:$0xff] }
  0x20   :  { %306 = vmatpush.bf16.msra.mxu2 %v559_v13  ;;  %v579_v32 = vld [vmem:[%s861_s4] ss:$0 sm:$0xff]  ;;  %v561_v38 = vld [vmem:[#allocation10] sm:$0xff]  ;;  %s767_s4 = smov [#allocation12]  }
  0x21   :  { %224 = vmatpush.bf16.msra.mxu1 %v550_v6  ;;  %v562_v37 = vld [vmem:[#allocation10 + $0x8] sm:$0xff]  ;;  %s419_s20 = sshll.u32 %s767_s4, 4  ;;  %s420_s20 = int_to_ptr.vmem [resolvable:$true] %s419_s20 }
  0x22   :  { %389 = vmatpush.bf16.msra.mxu3 %v567_v27  ;;  %v580_v39 = vld [vmem:[%s863_s6] ss:$0 sm:$0xff]  ;;  %s768_s6 = smov [#allocation11]  }
  0x23   :  { %v581_v45 = vld [vmem:[%s865_s8] ss:$0 sm:$0xff]  ;;  %s408_s26 = sshll.u32 %s768_s6, 4  ;;  %s409_s26 = int_to_ptr.vmem [resolvable:$true] %s408_s26 }
  0x24   :  { %307 = vmatpush.bf16.msra.mxu2 %v558_v14 }
  0x25   :  { %225 = vmatpush.bf16.msra.mxu1 %v549_v7 }
  0x26   :  { %390 = vmatpush.bf16.msra.mxu3 %v566_v28 }
  0x28   :  { %308 = vmatpush.bf16.msra.mxu2 %v557_v15 }
  0x29   :  { %226 = vmatpush.bf16.msra.mxu1 %v548_v8 }
  0x2a   :  { %391 = vmatpush.bf16.msra.mxu3 %v565_v29 }
  0x2c   :  { %309 = vmatpush.bf16.msra.mxu2 %v556_v16 }
  0x2d   :  { %227 = vmatpush.bf16.msra.mxu1 %v547_v9 }
  0x2e   :  { %392 = vmatpush.bf16.msra.mxu3 %v564_v30 }
  0x30   :  { %310 = vmatpush.bf16.msra.mxu2 %v555_v17 }
  0x31   :  { %228 = vmatpush.bf16.msra.mxu1 %v546_v10 }
  0x32   :  { %393 = vmatpush.bf16.msra.mxu3 %v563_v31 }
  0x34   :  { %311 = vmatpush.bf16.msra.mxu2 %v554_v19 }
  0x35   :  { %229 = vmatpush.bf16.msra.mxu1 %v545_v11 }
  0x36   :  { %394 = vmatpush.bf16.msra.mxu3 %v562_v37 }
  0x38   :  { %312 = vmatpush.bf16.msra.mxu2 %v553_v25 }
  0x3a   :  { %395 = vmatpush.bf16.msra.mxu3 %v561_v38 }
  0x9c   :  { %v148_v20 = vpop.f32.mrf.mxu0 }
  0x9d   :  { %v149_v21 = vadd.f32 %v578_v18, %v148_v20 }
  0x9f   :  { %v152_v22 = vmax.f32 %v149_v21, 0.0 }
  0xa1   :  { %v153_v23 = vpack.c.bf16 %v152_v22, %v152_v22 }
  0xa3   :  { %230 = vmatmul.bf16.vlgmr.msra.gmra.mxu1 %v153_v23 }
  0xa4   :  { %v150_v24 = vpop.f32.mrf.mxu0 }
 0x120   :  { %v231_v33 = vpop.f32.mrf.mxu1 }
 0x121   :  { %v232_v34 = vadd.f32 %v579_v32, %v231_v33 }
 0x123   :  { %v235_v35 = vpack.c.bf16 %v232_v34, %v232_v34 }
 0x125   :  { %236 = vst [vmem:[#allocation12] sm:$0xf] %v235_v35  ;;  %313 = vmatmul.bf16.vlgmr.msra.gmra.mxu2 %v235_v35 }
 0x126   :  { %424 = dma.vmem_to_hbm [thread:$0]  %s420_s20, 64, %s422_s23, [#allocation13]  }
 0x128   :  { %v233_v36 = vpop.f32.mrf.mxu1 }
 0x1a8   :  { %v314_v40 = vpop.f32.mrf.mxu2 }
 0x1a9   :  { %v315_v41 = vadd.f32 %v580_v39, %v314_v40 }
 0x1ab   :  { %v318_v42 = vmax.f32 %v315_v41, 0.0 }
 0x1ad   :  { %v319_v43 = vpack.c.bf16 %v318_v42, %v318_v42 }
 0x1af   :  { %396 = vmatmul.bf16.vlgmr.msra.gmra.mxu3 %v319_v43 }
 0x1b0   :  { %v316_v44 = vpop.f32.mrf.mxu2 }
 0x232   :  { %v397_v46 = vpop.f32.mrf.mxu3 }
 0x233   :  { %v398_v47 = vadd.f32 %v581_v45, %v397_v46 }
 0x235   :  { %v401_v48 = vpack.c.bf16 %v398_v47, %v398_v47 }
 0x237   :  { %402 = vst [vmem:[#allocation11] sm:$0xf] %v401_v48 }
 0x238   :  { %413 = dma.vmem_to_hbm [thread:$0]  %s409_s26, 64, %s411_s28, [#allocation4]  }
 0x23a   :  { %v399_v49 = vpop.f32.mrf.mxu3 }
 0x23b   :  { %756 = dma.done.wait [#allocation4], 64  }
 0x23c   :  { %757 = vsyncadd [#allocation4], 4294967232 }
 0x23d   :  { %758 = dma.done.wait [#allocation13], 64  }
 0x23e   :  { %759 = vsyncadd [#allocation13], 4294967232 }
 0x23f   :  { %433 = vsyncpa [#allocation3], 1 }
 0x240   :  { %434 = vsyncpa [#allocation6], 1 }
 0x241   :  { %435 = vsyncpa [#allocation9], 1 }
 0x242   :  { %436 = vsyncpa [#allocation4], 1 }
 0x243   :  { %437 = vsyncpa [#allocation13], 1 }

</bundles_post_ra>
